<compile_context>
chip_gen: v7x
topology: tpu7x:2x2x1
jax: 0.10.0
libtpu: 0.0.40
codegen_flags: <defaults>
</compile_context>

<pallas_src>
import jax
import jax.numpy as jnp
from jax import lax
from jax.experimental import pallas as pl
from jax.experimental.pallas import tpu as pltpu


def _resblock_kernel(cols_ref, w1_ref, b1_ref, w2_ref, b2_ref, out_ref):
    # cols_ref: (1, 9*Cin, H*W)  im2col slab of the *raw* (un-ReLU'd) input
    # w1_ref  : (Cmid, 9*Cin)    3x3 conv weight, flattened (ky,kx,ci) -> K
    # b1_ref  : (Cmid, 1)
    # w2_ref  : (Cin, Cmid)      1x1 conv weight
    # b2_ref  : (Cin, 1)
    # out_ref : (1, Cin, H*W)
    cin = out_ref.shape[1]

    cols = cols_ref[0].astype(jnp.float32)              # (9*Cin, H*W)

    # Residual = centre tap (ky=1, kx=1) of the un-ReLU'd slab == original x.
    x_res = cols[4 * cin:5 * cin, :]                     # (Cin, H*W)

    # ReLU(x) on the padded slab (zero padding is unchanged by ReLU).
    hp = jnp.maximum(cols, 0.0)                          # (9*Cin, H*W)

    # 3x3 conv as a single im2col matmul on the MXU: M=Cmid, K=9*Cin, N=H*W.
    h1 = jnp.dot(w1_ref[...], hp,
                 preferred_element_type=jnp.float32) + b1_ref[...]
    h1 = jnp.maximum(h1, 0.0)                            # (Cmid, H*W)

    # 1x1 conv == dense matmul over channels: M=Cin, K=Cmid, N=H*W.
    y = jnp.dot(w2_ref[...], h1,
                preferred_element_type=jnp.float32) + b2_ref[...]

    out_ref[0] = (y + x_res).astype(out_ref.dtype)       # residual add, lane-dense store


@jax.jit
def resblock_forward(x_nchw, w1_oihw, b1, w2_oihw, b2):
    """x_nchw: (B, Cin, H, W) float32 -> (B, Cin, H, W) float32."""
    B, Cin, H, W = x_nchw.shape
    Cmid = w1_oihw.shape[0]
    HW = H * W

    # Glue (plain XLA, cheap at these sizes): zero-pad and im2col the raw
    # input.  Tap order t = ky*3 + kx; the t=4 block is exactly x and doubles
    # as the residual inside the kernel, so x is streamed to HBM only once.
    xp = jnp.pad(x_nchw, ((0, 0), (0, 0), (1, 1), (1, 1)))
    taps = [xp[:, :, ky:ky + H, kx:kx + W].reshape(B, Cin, HW)
            for ky in range(3) for kx in range(3)]
    cols = jnp.concatenate(taps, axis=1)                 # (B, 9*Cin, HW)

    # Weight reshapes (match tap ordering): (Cmid,Cin,3,3) -> (Cmid, 9*Cin).
    w1m = jnp.transpose(w1_oihw, (0, 2, 3, 1)).reshape(Cmid, 9 * Cin)
    w2m = w2_oihw[:, :, 0, 0]                            # (Cin, Cmid)
    b1c = b1.reshape(Cmid, 1)
    b2c = b2.reshape(Cin, 1)

    out_flat = pl.pallas_call(
        _resblock_kernel,
        out_shape=jax.ShapeDtypeStruct((B, Cin, HW), x_nchw.dtype),
        grid_spec=pltpu.PrefetchScalarGridSpec(
            num_scalar_prefetch=0,
            grid=(B,),
            in_specs=[
                pl.BlockSpec((1, 9 * Cin, HW), lambda b: (b, 0, 0)),
                pl.BlockSpec((Cmid, 9 * Cin), lambda b: (0, 0)),
                pl.BlockSpec((Cmid, 1), lambda b: (0, 0)),
                pl.BlockSpec((Cin, Cmid), lambda b: (0, 0)),
                pl.BlockSpec((Cin, 1), lambda b: (0, 0)),
            ],
            out_specs=pl.BlockSpec((1, Cin, HW), lambda b: (b, 0, 0)),
        ),
        compiler_params=pltpu.CompilerParams(
            dimension_semantics=("parallel",)),
    )(cols, w1m, b1c, w2m, b2c)

    return out_flat.reshape(B, Cin, H, W)                # free reshape (contiguous)


def _reference_forward(x_nchw, w1_oihw, b1, w2_oihw, b2):
    """Pure-JAX reference matching PyTorch semantics (NCHW in/out)."""
    h = jnp.maximum(x_nchw, 0.0)
    y1 = lax.conv_general_dilated(
        h, w1_oihw, (1, 1), "SAME",
        dimension_numbers=("NCHW", "OIHW", "NCHW")) + b1[None, :, None, None]
    h2 = jnp.maximum(y1, 0.0)
    y2 = lax.conv_general_dilated(
        h2, w2_oihw, (1, 1), "SAME",
        dimension_numbers=("NCHW", "OIHW", "NCHW")) + b2[None, :, None, None]
    return y2 + x_nchw


if __name__ == "__main__":
    # Small shapes consistent with ResBlock(in_channel=4, channel=32).
    B, Cin, H, W = 2, 4, 16, 16
    Cmid = 32

    key = jax.random.PRNGKey(0)
    kx, k1, kb1, k2, kb2 = jax.random.split(key, 5)

    x = jax.random.normal(kx, (B, Cin, H, W), dtype=jnp.float32)
    # PyTorch Conv2d weight layout: OIHW.
    w1 = jax.random.normal(k1, (Cmid, Cin, 3, 3), dtype=jnp.float32) * 0.1
    b1 = jax.random.normal(kb1, (Cmid,), dtype=jnp.float32) * 0.1
    w2 = jax.random.normal(k2, (Cin, Cmid, 1, 1), dtype=jnp.float32) * 0.1
    b2 = jax.random.normal(kb2, (Cin,), dtype=jnp.float32) * 0.1

    out = resblock_forward(x, w1, b1, w2, b2)
    out = jax.block_until_ready(out)

    ref = _reference_forward(x, w1, b1, w2, b2)
    assert out.shape == (B, Cin, H, W)
    assert jnp.allclose(out, ref, atol=1e-4, rtol=1e-4), "mismatch vs reference"

    print("KERNEL_OK")
</pallas_src>

<mosaic_0001>
module attributes {stable_mosaic.version = 11 : i64} {
  func.func @_resblock_kernel(%arg0: i32, %arg1: memref<1x36x256xf32, #tpu.memory_space<vmem>>, %arg2: memref<32x36xf32, #tpu.memory_space<vmem>>, %arg3: memref<32x1xf32, #tpu.memory_space<vmem>>, %arg4: memref<4x32xf32, #tpu.memory_space<vmem>>, %arg5: memref<4x1xf32, #tpu.memory_space<vmem>>, %arg6: memref<1x4x256xf32, #tpu.memory_space<vmem>>) attributes {dimension_semantics = [#tpu.dimension_semantics<parallel>], iteration_bounds = array<i64: 2>, scalar_prefetch = 0 : i64, scratch_operands = 0 : i64, tpu.core_type = #tpu.core_type<tc>, window_params = [{transform_indices = @transform_0, window_bounds = array<i64: 1, 36, 256>}, {pipeline_mode = #tpu.pipeline_mode<synchronous>, transform_indices = @transform_1, window_bounds = array<i64: 32, 36>}, {pipeline_mode = #tpu.pipeline_mode<synchronous>, transform_indices = @transform_2, window_bounds = array<i64: 32, 1>}, {pipeline_mode = #tpu.pipeline_mode<synchronous>, transform_indices = @transform_3, window_bounds = array<i64: 4, 32>}, {pipeline_mode = #tpu.pipeline_mode<synchronous>, transform_indices = @transform_4, window_bounds = array<i64: 4, 1>}, {transform_indices = @transform_5, window_bounds = array<i64: 1, 4, 256>}]} {
    %c0 = arith.constant 0 : index
    %c0_0 = arith.constant 0 : index
    %c0_1 = arith.constant 0 : index
    %0 = vector.load %arg1[%c0, %c0_0, %c0_1] : memref<1x36x256xf32, #tpu.memory_space<vmem>>, vector<1x36x256xf32>
    %1 = vector.shape_cast %0 : vector<1x36x256xf32> to vector<36x256xf32>
    %2 = vector.extract_strided_slice %1 {offsets = [16, 0], sizes = [4, 256], strides = [1, 1]} : vector<36x256xf32> to vector<4x256xf32>
    %cst = arith.constant 0.000000e+00 : f32
    %3 = vector.broadcast %cst : f32 to vector<36x256xf32>
    %4 = arith.maximumf %1, %3 : vector<36x256xf32>
    %c0_2 = arith.constant 0 : index
    %c0_3 = arith.constant 0 : index
    %5 = vector.load %arg2[%c0_2, %c0_3] : memref<32x36xf32, #tpu.memory_space<vmem>>, vector<32x36xf32>
    %cst_4 = arith.constant dense<0.000000e+00> : vector<32x256xf32>
    %6 = tpu.matmul %5, %4, %cst_4 {dimension_numbers = #tpu.dot_dimension_numbers<[1], [0], [0], [1], [0, 0, 1, 1], [], []>} : vector<32x36xf32>, vector<36x256xf32>, vector<32x256xf32> -> vector<32x256xf32>
    %c0_5 = arith.constant 0 : index
    %c0_6 = arith.constant 0 : index
    %7 = vector.load %arg3[%c0_5, %c0_6] : memref<32x1xf32, #tpu.memory_space<vmem>>, vector<32x1xf32>
    %8 = vector.broadcast %7 : vector<32x1xf32> to vector<32x256xf32>
    %9 = arith.addf %6, %8 : vector<32x256xf32>
    %cst_7 = arith.constant 0.000000e+00 : f32
    %10 = vector.broadcast %cst_7 : f32 to vector<32x256xf32>
    %11 = arith.maximumf %9, %10 : vector<32x256xf32>
    %c0_8 = arith.constant 0 : index
    %c0_9 = arith.constant 0 : index
    %12 = vector.load %arg4[%c0_8, %c0_9] : memref<4x32xf32, #tpu.memory_space<vmem>>, vector<4x32xf32>
    %cst_10 = arith.constant dense<0.000000e+00> : vector<4x256xf32>
    %13 = tpu.matmul %12, %11, %cst_10 {dimension_numbers = #tpu.dot_dimension_numbers<[1], [0], [0], [1], [0, 0, 1, 1], [], []>} : vector<4x32xf32>, vector<32x256xf32>, vector<4x256xf32> -> vector<4x256xf32>
    %c0_11 = arith.constant 0 : index
    %c0_12 = arith.constant 0 : index
    %14 = vector.load %arg5[%c0_11, %c0_12] : memref<4x1xf32, #tpu.memory_space<vmem>>, vector<4x1xf32>
    %15 = vector.broadcast %14 : vector<4x1xf32> to vector<4x256xf32>
    %16 = arith.addf %13, %15 : vector<4x256xf32>
    %17 = arith.addf %16, %2 : vector<4x256xf32>
    %c0_13 = arith.constant 0 : index
    %c0_14 = arith.constant 0 : index
    %c0_15 = arith.constant 0 : index
    %18 = vector.load %arg6[%c0_13, %c0_14, %c0_15] : memref<1x4x256xf32, #tpu.memory_space<vmem>>, vector<1x4x256xf32>
    %19 = vector.shape_cast %18 : vector<1x4x256xf32> to vector<4x256xf32>
    %20 = vector.shape_cast %17 : vector<4x256xf32> to vector<1x4x256xf32>
    tpu.vector_store %arg6[%c0_13, %c0_14, %c0_15], %20 {strides = array<i32>} : memref<1x4x256xf32, #tpu.memory_space<vmem>>, vector<1x4x256xf32>,
    return
  }
  func.func @transform_0(%arg0: i32) -> (i32, i32, i32) {
    %c0_i32 = arith.constant 0 : i32
    %c0_i32_0 = arith.constant 0 : i32
    %c0_i32_1 = arith.constant 0 : i32
    return %arg0, %c0_i32, %c0_i32_0 : i32, i32, i32
  }
  func.func @transform_1(%arg0: i32) -> (i32, i32) {
    %c0_i32 = arith.constant 0 : i32
    %c0_i32_0 = arith.constant 0 : i32
    %c0_i32_1 = arith.constant 0 : i32
    return %c0_i32, %c0_i32_0 : i32, i32
  }
  func.func @transform_2(%arg0: i32) -> (i32, i32) {
    %c0_i32 = arith.constant 0 : i32
    %c0_i32_0 = arith.constant 0 : i32
    %c0_i32_1 = arith.constant 0 : i32
    return %c0_i32, %c0_i32_0 : i32, i32
  }
  func.func @transform_3(%arg0: i32) -> (i32, i32) {
    %c0_i32 = arith.constant 0 : i32
    %c0_i32_0 = arith.constant 0 : i32
    %c0_i32_1 = arith.constant 0 : i32
    return %c0_i32, %c0_i32_0 : i32, i32
  }
  func.func @transform_4(%arg0: i32) -> (i32, i32) {
    %c0_i32 = arith.constant 0 : i32
    %c0_i32_0 = arith.constant 0 : i32
    %c0_i32_1 = arith.constant 0 : i32
    return %c0_i32, %c0_i32_0 : i32, i32
  }
  func.func @transform_5(%arg0: i32) -> (i32, i32, i32) {
    %c0_i32 = arith.constant 0 : i32
    %c0_i32_0 = arith.constant 0 : i32
    %c0_i32_1 = arith.constant 0 : i32
    return %arg0, %c0_i32, %c0_i32_0 : i32, i32, i32
  }
}

</mosaic_0001>

<bundles_post_ra>
// kernel: resblock_forward.1
= control target key start
LH: loop header
LB: loop body
LE: loop exit
PB: predicated region body
PF: predicated region fallthrough
CT: control target
= control target key end

     0   :  { %s621_s18 = smov 0   ;;  %s680_s0 = inlined_call_operand.vmem [shape: f32[2,36,256], index: 0, kind: input, shape index: {}]   ;;  %s681_s1 = inlined_call_operand.vmem [shape: f32[32,36], index: 1, kind: input, shape index: {}]   ;;  %s682_s2 = inlined_call_operand.vmem [shape: f32[32,1], index: 2, kind: input, shape index: {}]   ;;  %s683_s3 = inlined_call_operand.vmem [shape: f32[4,32], index: 3, kind: input, shape index: {}]   ;;  %s684_s4 = inlined_call_operand.vmem [shape: f32[4,1], index: 4, kind: input, shape index: {}]   ;;  %s685_s5 = inlined_call_operand.vmem [shape: f32[2,4,256], index: 5, kind: output, shape index: {}]  }
   0x1 LB: > { %s534_s19 = sadd.s32 4294967295, %s587_s18   ;;  %p538_p0 = scmp.ge.s32.totalorder %s587_s18, 1  ;;  %s587_s18 = sphi %s621_s18, %s15_s18  }
   0x2   : > { %p187_p1 = scmp.lt.s32.totalorder %s587_s18, 3 }
   0x4   : > { %p188_p2 = pnand %p538_p0, %p187_p1 }
   0x5   : > { %p215_p3 = scmp.lt.s32.totalorder (!%p188_p2), %s534_s19, 1  ;;  %v589_v0 = vmov (!%p188_p2), 0.0   ;;  %v249_v1 = vld [vmem:[%s682_s2] sm:$0xff] (!%p188_p2)  ;;  %v590_v2 = vmov (!%p188_p2), 0   ;;  %v251_v3 = vld [vmem:[%s682_s2 + $0x10] sm:$0xff] (!%p188_p2)  ;;  %v250_v4 = vld [vmem:[%s682_s2 + $0x8] sm:$0xff] (!%p188_p2) }
   0x6   : > { %191 = sbr.rel (%p188_p2) target bundleno = 487 (0x1e7), region = 40  ;;  %357 = vmatprep.mubr.f32.mxu0 (!%p188_p2), %v589_v0  ;;  %465 = vmatprep.mubr.f32.mxu1 (!%p188_p2), %v589_v0  ;;  %v252_v5 = vld [vmem:[%s682_s2 + $0x18] sm:$0xff] (!%p188_p2)  ;;  %v391_v6 = vld [vmem:[%s684_s4] sm:$0xf] (!%p188_p2)  ;;  %vm286_vm0 = vcmask (!%p188_p2), 1043456   ;;  %vm273_vm1 = vcmask (!%p188_p2), 293888  }
   0x7   : > { %579 = vset.pattern.permute.xlu0 (!%p188_p2), %v590_v2  ;;  %580 = vset.pattern.permute.xlu1 (!%p188_p2), %v590_v2  ;;  %v245_v31 = vld [vmem:[%s681_s1] sm:$0xff] (!%p188_p2)  ;;  %v246_v32 = vld [vmem:[%s681_s1 + $0x8] sm:$0xff] (!%p188_p2)  ;;  %v247_v33 = vld [vmem:[%s681_s1 + $0x10] sm:$0xff] (!%p188_p2)  ;;  %vm397_vm2 = vcmask (!%p188_p2), 261120  }
   0x8   : > { %255 = vperm.xlu0 (!%p188_p2), %579, %v249_v1   ;;  %265 = vperm.xlu1 (!%p188_p2), %580, %v251_v3   ;;  %v248_v34 = vld [vmem:[%s681_s1 + $0x18] sm:$0xff] (!%p188_p2)  ;;  %v390_v3 = vld [vmem:[%s683_s3] sm:$0xf] (!%p188_p2) }
   0xc   : > { %260 = vperm.xlu0 (!%p188_p2), %579, %v250_v4   ;;  %270 = vperm.xlu1 (!%p188_p2), %580, %v252_v5  }
   0xd   : > { %s687_s19 = smov (!%p215_p3, %s534_s19), 1 }
   0xe   : > { %s568_s24 = smul.u32 80, %s687_s19  ;;  %s551_s21 = sshll.u32 %s687_s19, 3 }
  0x10   : > { %s219_s6 = scalar_lea.vmem %s680_s0, %s568_s24  ;;  %394 = vperm.xlu0 %579, %v391_v6   ;;  %s224_s24 = scalar_lea.vmem %s685_s5, %s551_s21 }
  0x11   : > { %v226_v7 = vld [vmem:[%s219_s6 + $0x8] sm:$0xff]  ;;  %v228_v8 = vld [vmem:[%s219_s6 + $0x18] sm:$0xff]  ;;  %v225_v9 = vld [vmem:[%s219_s6] sm:$0xff] }
  0x12   : > { %v236_v10 = vmax.f32 %v226_v7, 0.0  ;;  %v238_v11 = vmax.f32 %v228_v8, 0.0  ;;  %v227_v12 = vld [vmem:[%s219_s6 + $0x10] sm:$0xff]  ;;  %v235_v13 = vmax.f32 %v225_v9, 0.0  ;;  %v650_v14 = vld [vmem:[%s219_s6 + $0x28] sm:$0xff]  ;;  %v232_v15 = vld [vmem:[%s219_s6 + $0x38] sm:$0xff] }
  0x13   : > { %v237_v16 = vmax.f32 %v227_v12, 0.0  ;;  %v240_v17 = vmax.f32 %v650_v14, 0.0  ;;  %v242_v18 = vmax.f32 %v232_v15, 0.0  ;;  %v653_v19 = vld [vmem:[%s219_s6 + $0x20] sm:$0xff]  ;;  %v231_v20 = vld [vmem:[%s219_s6 + $0x30] sm:$0xff] }
  0x14   : > { %v552_v21 = vpack.c.bf16 %v238_v11, %v236_v10  ;;  %v239_v22 = vmax.f32 %v653_v19, 0.0  ;;  %v241_v23 = vmax.f32 %v231_v20, 0.0  ;;  %v234_v26 = vld [vmem:[%s219_s6 + $0x48] sm:$0xf]  ;;  %v233_v29 = vld [vmem:[%s219_s6 + $0x40] sm:$0xf] }
  0x15   : > { %v554_v24 = vpack.c.bf16 %v237_v16, %v235_v13  ;;  %v556_v25 = vpack.c.bf16 %v242_v18, %v240_v17  ;;  %v244_v28 = vmax.f32 %v234_v26, 0.0  ;;  %v243_v30 = vmax.f32 %v233_v29, 0.0 }
  0x16   : > { %553 = vmatprep.subr.bf16.mxu0 %v552_v21  ;;  %v558_v27 = vpack.c.bf16 %v241_v23, %v239_v22 }
  0x17   : > { %555 = vmatpush1.bf16.msra.mxu0 %v554_v24 }
  0x18   : > { %557 = vmatprep.subr.bf16.mxu0 %v556_v25 }
  0x1b   : > { %559 = vmatpush1.bf16.msra.mxu0 %v558_v27 }
  0x1c   : > { %542 = vmatprep.subr.msk.mxu0 %vm286_vm0, %v244_v28 }
  0x1f   : > { %543 = vmatpush1.msk.msra.mxu0 %vm286_vm0, %v243_v30 }
  0x20   : > { %544 = vmatmul.mubr.msk.f32.vlgmr.msra.gmra.mrb[0].mxu0 %vm273_vm1, %v245_v31 }
  0x21   : > { %363 = vmatprep.mubr.f32.mxu0 %v589_v0 }
  0x24   : > { %545 = vmatmul.mubr.msk.f32.gmra.mrb[2].mxu0 %vm273_vm1, %v246_v32 }
  0x25   : > { %369 = vmatprep.mubr.f32.mxu0 %v589_v0 }
  0x28   : > { %546 = vmatmul.mubr.msk.f32.gmra.mrb[4].mxu0 %vm273_vm1, %v247_v33 }
  0x29   : > { %375 = vmatprep.mubr.f32.mxu0 %v589_v0 }
  0x2c   : > { %547 = vmatmul.mubr.msk.f32.gmra.mrb[6].mxu0 %vm273_vm1, %v248_v34 }
  0x87   : > { %v256_v35 = vpop.permute.xlu0 %255  ;;  %v266_v44 = vpop.permute.xlu1 %265 }
  0x8b   : > { %v261_v39 = vpop.permute.xlu0 %260  ;;  %v271_v55 = vpop.permute.xlu1 %270 }
  0x8f   : > { %v395_v4 = vpop.permute.xlu0 %394 }
  0xf3   : > { %v359_v36 = vpop.f32.mrb[0].mxu0 }
  0xf4   : > { %v361_v37 = vpop.f32.mrb[1].mxu0  ;;  %v360_v38 = vadd.f32 %v359_v36, %v256_v35 }
  0xf5   : > { %v362_v40 = vadd.f32 %v361_v37, %v256_v35 }
  0xf6   : > { %v382_v46 = vmax.f32 %v360_v38, 0.0 }
  0xf7   : > { %v365_v41 = vpop.f32.mrb[2].mxu0  ;;  %v383_v48 = vmax.f32 %v362_v40, 0.0 }
  0xf8   : > { %v366_v42 = vadd.f32 %v365_v41, %v261_v39  ;;  %v367_v43 = vpop.f32.mrb[3].mxu0 }
  0xf9   : > { %v368_v45 = vadd.f32 %v367_v43, %v261_v39 }
  0xfa   : > { %v384_v47 = vmax.f32 %v366_v42, 0.0 }
  0xfb   : > { %v385_v49 = vmax.f32 %v368_v45, 0.0  ;;  %v371_v50 = vpop.f32.mrb[4].mxu0 }
  0xfc   : > { %v373_v51 = vpop.f32.mrb[5].mxu0  ;;  %v562_v52 = vpack.c.bf16 %v384_v47, %v382_v46  ;;  %v372_v54 = vadd.f32 %v371_v50, %v266_v44 }
  0xfd   : > { %v560_v53 = vpack.c.bf16 %v385_v49, %v383_v48  ;;  %v374_v56 = vadd.f32 %v373_v51, %v266_v44 }
  0xfe   : > { %v386_v61 = vmax.f32 %v372_v54, 0.0 }
  0xff   : > { %v377_v57 = vpop.f32.mrb[6].mxu0  ;;  %561 = vmatprep.subr.bf16.mxu1 %v560_v53  ;;  %v387_v63 = vmax.f32 %v374_v56, 0.0 }
 0x100   : > { %v378_v58 = vadd.f32 %v377_v57, %v271_v55  ;;  %v379_v59 = vpop.f32.mrb[7].mxu0  ;;  %563 = vmatpush1.bf16.msra.mxu1 %v562_v52 }
 0x101   : > { %v380_v60 = vadd.f32 %v379_v59, %v271_v55 }
 0x102   : > { %v388_v62 = vmax.f32 %v378_v58, 0.0 }
 0x103   : > { %v389_v0 = vmax.f32 %v380_v60, 0.0 }
 0x104   : > { %v566_v1 = vpack.c.bf16 %v388_v62, %v386_v61 }
 0x105   : > { %v564_v2 = vpack.c.bf16 %v389_v0, %v387_v63 }
 0x107   : > { %565 = vmatprep.subr.bf16.mxu1 %v564_v2 }
 0x108   : > { %567 = vmatpush1.bf16.msra.mxu1 %v566_v1 }
 0x10b   : > { %548 = vmatmul.mubr.msk.f32.vlgmr.msra.gmra.mrb[0].mxu1 %vm397_vm2, %v390_v3 }
 0x1de   : > { %v467_v5 = vpop.f32.mrb[0].mxu1 }
 0x1df   : > { %v468_v6 = vadd.f32 %v467_v5, %v395_v4  ;;  %v469_v7 = vpop.f32.mrb[1].mxu1 }
 0x1e0   : > { %v470_v8 = vadd.f32 %v469_v7, %v395_v4 }
 0x1e1   : > { %v472_v9 = vadd.f32 %v468_v6, %v653_v19 }
 0x1e2   : > { %v473_v10 = vadd.f32 %v470_v8, %v650_v14 }
 0x1e4   : > { %v476_v11 = vcombine.low %v472_v9, %v473_v10 }
 0x1e6   : > { %478 = vst [vmem:[%s224_s24] sm:$0xff] %v476_v11 }
 0x1e7 PF: > { %s15_s18 = sadd.s32 1, %s587_s18  }
 0x1e8   : > { %p12_p4 = scmp.ge.s32.totalorder %s15_s18, 4  }
 0x1ea   :  { %14 = sbr.rel (!%p12_p4) target bundleno = 1 (0x1), region = 70 }

</bundles_post_ra>
